<compile_context>
chip_gen: v7x
topology: tpu7x:2x2x1
jax: 0.10.0
libtpu: 0.0.40
codegen_flags: <defaults>
</compile_context>

<pallas_src>
import jax
import jax.numpy as jnp
from jax.experimental import pallas as pl
from jax.experimental.pallas import tpu as pltpu


def _round_up(x, m):
    return ((x + m - 1) // m) * m


# ---------------------------------------------------------------------------
# Kernel: the whole 5-layer MLP on one batch tile.
# ---------------------------------------------------------------------------
def _mlp_kernel(x_ref,
                w1_ref, b1_ref,
                w2_ref, b2_ref,
                w3_ref, b3_ref,
                w4_ref, b4_ref,
                w5_ref, b5_ref,
                o_ref):
    # bf16 operands into the MXU, f32 accumulation; bias + ReLU in f32.
    h = x_ref[...].astype(jnp.bfloat16)

    h = jnp.dot(h, w1_ref[...], preferred_element_type=jnp.float32) + b1_ref[...]
    h = jnp.maximum(h, 0.0).astype(jnp.bfloat16)

    h = jnp.dot(h, w2_ref[...], preferred_element_type=jnp.float32) + b2_ref[...]
    h = jnp.maximum(h, 0.0).astype(jnp.bfloat16)

    h = jnp.dot(h, w3_ref[...], preferred_element_type=jnp.float32) + b3_ref[...]
    h = jnp.maximum(h, 0.0).astype(jnp.bfloat16)

    h = jnp.dot(h, w4_ref[...], preferred_element_type=jnp.float32) + b4_ref[...]
    h = jnp.maximum(h, 0.0).astype(jnp.bfloat16)

    out = jnp.dot(h, w5_ref[...], preferred_element_type=jnp.float32) + b5_ref[...]
    o_ref[...] = out.astype(o_ref.dtype)


def _const_2d_map(i):
    # Weights / biases: same (only) block for every batch tile -> fetched once,
    # VMEM resident across tiles.
    return (0, 0)


def _batch_tile_map(i):
    # x / out: walk the batch dimension.
    return (i, 0)


def _pick_batch_tile(B):
    """Batch-tile size.

    Small B: one (possibly ragged) tile at 8-row sublane granularity.
    Large B: big tiles (multiple of 128, up to 512) amortize the ~0.35 us
    per-grid-step overhead and keep the x/out DMA streams near the HBM
    roofline, while always leaving >= 2 grid steps so the "parallel" batch
    axis can shard across v7x's two TensorCores (no-op on v5e/v6e, 1 TC).
    """
    if B <= 128:
        return _round_up(B, 8)
    half = (B // 2) // 128 * 128          # largest 128-multiple <= B/2
    return max(128, min(512, half))


# ---------------------------------------------------------------------------
# One-time parameter prep (hoisted out of the per-step forward).
# ---------------------------------------------------------------------------
def prepare_params(params):
    """Cast weights to bf16 and biases to f32 (1, out) rows.  Do this once and
    reuse the result for every forward call so the kernel's DMA is the only
    per-call weight traffic."""
    prepped = []
    for w, b in params:
        w_bf16 = jnp.asarray(w, jnp.bfloat16)
        b_f32 = jnp.asarray(b, jnp.float32).reshape(1, -1)
        prepped.append((w_bf16, b_f32))
    return prepped


# ---------------------------------------------------------------------------
# Forward wrapper.
# ---------------------------------------------------------------------------
def complex_sequential_dqn_forward(x, prepped_params):
    """Full MLP forward in one batch-tiled Pallas kernel.

    x:              (B, input_size) float32
    prepped_params: output of prepare_params(); list of (W bf16, b f32(1,out)),
                    W shaped (in_features, out_features) (torch weight, transposed).
    Returns (B, output_size) float32.
    """
    B, in_size = x.shape
    out_size = prepped_params[-1][0].shape[1]

    TB = _pick_batch_tile(B)
    grid = (pl.cdiv(B, TB),)

    flat_args = [x]
    in_specs = [pl.BlockSpec((TB, in_size), _batch_tile_map)]
    for w, b in prepped_params:
        flat_args.append(w)
        in_specs.append(pl.BlockSpec(w.shape, _const_2d_map))
        flat_args.append(b)
        in_specs.append(pl.BlockSpec(b.shape, _const_2d_map))

    out_specs = pl.BlockSpec((TB, out_size), _batch_tile_map)

    # Advisory cost estimate so XLA schedules the custom call sensibly inside
    # a larger jit (e.g. a full DQN training step).
    flops = sum(2 * B * w.shape[0] * w.shape[1] for w, _ in prepped_params)
    bytes_accessed = int(x.size) * x.dtype.itemsize
    bytes_accessed += sum(int(w.size) * w.dtype.itemsize +
                          int(b.size) * b.dtype.itemsize
                          for w, b in prepped_params)
    bytes_accessed += B * out_size * 4  # f32 output
    cost = pl.CostEstimate(flops=int(flops), transcendentals=0,
                           bytes_accessed=int(bytes_accessed))

    # NOTE: at these sizes all weights (+ double buffers) fit trivially inside
    # the scoped-VMEM default on every generation.  If hidden_size is ever
    # scaled to ~1k+ on v7x (64 MiB VMEM), single-buffer the constant weight
    # blocks (pipeline_mode=pl.Buffered(1)) and/or set
    # pltpu.CompilerParams(vmem_limit_bytes=...) before resorting to tiling
    # the weights over an extra grid axis.
    return pl.pallas_call(
        _mlp_kernel,
        out_shape=jax.ShapeDtypeStruct((B, out_size), jnp.float32),
        grid=grid,
        in_specs=in_specs,
        out_specs=out_specs,
        compiler_params=pltpu.CompilerParams(
            dimension_semantics=("parallel",)),
        cost_estimate=cost,
    )(*flat_args)


# ---------------------------------------------------------------------------
# Parameter construction (torch.nn.Linear-style init) and pure-JAX references.
# ---------------------------------------------------------------------------
def init_linear_params(key, in_features, out_features):
    """Deterministic init matching torch.nn.Linear default (uniform +-1/sqrt(fan_in)).
    Weight returned as (in_features, out_features) == torch weight transposed."""
    kw, kb = jax.random.split(key)
    bound = 1.0 / jnp.sqrt(jnp.float32(in_features))
    w = jax.random.uniform(kw, (in_features, out_features),
                           minval=-bound, maxval=bound, dtype=jnp.float32)
    b = jax.random.uniform(kb, (1, out_features),
                           minval=-bound, maxval=bound, dtype=jnp.float32)
    return w, b


def build_params(key, input_size, hidden_size, output_size):
    dims = [
        (input_size, hidden_size),
        (hidden_size, 2 * hidden_size),
        (2 * hidden_size, 2 * hidden_size),
        (2 * hidden_size, hidden_size),
        (hidden_size, output_size),
    ]
    params = []
    for fi, fo in dims:
        key, sub = jax.random.split(key)
        params.append(init_linear_params(sub, fi, fo))
    return params


def reference_forward_f32(x, params):
    """Pure-JAX f32 reference (exact torch semantics)."""
    h = x
    for i, (w, b) in enumerate(params):
        h = h @ w + b
        if i < len(params) - 1:
            h = jnp.maximum(h, 0.0)
    return h


def reference_forward_bf16(x, params):
    """Pure-JAX reference mirroring the kernel's bf16-in / f32-accumulate math."""
    h = x.astype(jnp.bfloat16)
    for i, (w, b) in enumerate(params):
        h = jnp.dot(h, w.astype(jnp.bfloat16),
                    preferred_element_type=jnp.float32) + b
        if i < len(params) - 1:
            h = jnp.maximum(h, 0.0).astype(jnp.bfloat16)
    return h


if __name__ == "__main__":
    # Small shapes consistent with the module: x is (batch, input_size).
    batch = 8
    input_size = 16
    hidden_size = 32
    output_size = 4

    key = jax.random.PRNGKey(0)
    kx, kp = jax.random.split(key)

    x = jax.random.normal(kx, (batch, input_size), dtype=jnp.float32)
    params = build_params(kp, input_size, hidden_size, output_size)

    # One-time prep (cached alongside params in a real DQN loop).
    prepped = prepare_params(params)

    out = complex_sequential_dqn_forward(x, prepped)
    out = jax.block_until_ready(out)
    assert out.shape == (batch, output_size), out.shape

    # Tight check against a reference using the same bf16-in / f32-acc math.
    ref_bf16 = reference_forward_bf16(x, params)
    assert jnp.allclose(out, ref_bf16, atol=1e-2, rtol=1e-2), (
        float(jnp.max(jnp.abs(out - ref_bf16))))

    # Looser check against the exact f32 torch-equivalent reference
    # (difference is purely the bf16 quantization of dot inputs).
    ref_f32 = reference_forward_f32(x, params)
    assert jnp.allclose(out, ref_f32, atol=5e-2, rtol=5e-2), (
        float(jnp.max(jnp.abs(out - ref_f32))))

    print("KERNEL_OK")
</pallas_src>

<mosaic_0001>
module attributes {stable_mosaic.version = 11 : i64} {
  func.func @_mlp_kernel(%arg0: i32, %arg1: memref<8x16xf32, #tpu.memory_space<vmem>>, %arg2: memref<16x32xbf16, #tpu.memory_space<vmem>>, %arg3: memref<1x32xf32, #tpu.memory_space<vmem>>, %arg4: memref<32x64xbf16, #tpu.memory_space<vmem>>, %arg5: memref<1x64xf32, #tpu.memory_space<vmem>>, %arg6: memref<64x64xbf16, #tpu.memory_space<vmem>>, %arg7: memref<1x64xf32, #tpu.memory_space<vmem>>, %arg8: memref<64x32xbf16, #tpu.memory_space<vmem>>, %arg9: memref<1x32xf32, #tpu.memory_space<vmem>>, %arg10: memref<32x4xbf16, #tpu.memory_space<vmem>>, %arg11: memref<1x4xf32, #tpu.memory_space<vmem>>, %arg12: memref<8x4xf32, #tpu.memory_space<vmem>>) attributes {dimension_semantics = [#tpu.dimension_semantics<parallel>], iteration_bounds = array<i64: 1>, scalar_prefetch = 0 : i64, scratch_operands = 0 : i64, tpu.core_type = #tpu.core_type<tc>, window_params = [{transform_indices = @transform_0, window_bounds = array<i64: 8, 16>}, {pipeline_mode = #tpu.pipeline_mode<synchronous>, transform_indices = @transform_1, window_bounds = array<i64: 16, 32>}, {pipeline_mode = #tpu.pipeline_mode<synchronous>, transform_indices = @transform_2, window_bounds = array<i64: 1, 32>}, {pipeline_mode = #tpu.pipeline_mode<synchronous>, transform_indices = @transform_3, window_bounds = array<i64: 32, 64>}, {pipeline_mode = #tpu.pipeline_mode<synchronous>, transform_indices = @transform_4, window_bounds = array<i64: 1, 64>}, {pipeline_mode = #tpu.pipeline_mode<synchronous>, transform_indices = @transform_5, window_bounds = array<i64: 64, 64>}, {pipeline_mode = #tpu.pipeline_mode<synchronous>, transform_indices = @transform_6, window_bounds = array<i64: 1, 64>}, {pipeline_mode = #tpu.pipeline_mode<synchronous>, transform_indices = @transform_7, window_bounds = array<i64: 64, 32>}, {pipeline_mode = #tpu.pipeline_mode<synchronous>, transform_indices = @transform_8, window_bounds = array<i64: 1, 32>}, {pipeline_mode = #tpu.pipeline_mode<synchronous>, transform_indices = @transform_9, window_bounds = array<i64: 32, 4>}, {pipeline_mode = #tpu.pipeline_mode<synchronous>, transform_indices = @transform_10, window_bounds = array<i64: 1, 4>}, {transform_indices = @transform_11, window_bounds = array<i64: 8, 4>}]} {
    %c0 = arith.constant 0 : index
    %c0_0 = arith.constant 0 : index
    %0 = vector.load %arg1[%c0, %c0_0] : memref<8x16xf32, #tpu.memory_space<vmem>>, vector<8x16xf32>
    %1 = arith.truncf %0 : vector<8x16xf32> to vector<8x16xbf16>
    %c0_1 = arith.constant 0 : index
    %c0_2 = arith.constant 0 : index
    %2 = vector.load %arg2[%c0_1, %c0_2] : memref<16x32xbf16, #tpu.memory_space<vmem>>, vector<16x32xbf16>
    %cst = arith.constant dense<0.000000e+00> : vector<8x32xf32>
    %3 = tpu.matmul %1, %2, %cst {dimension_numbers = #tpu.dot_dimension_numbers<[1], [0], [0], [1], [0, 0, 1, 1], [], []>} : vector<8x16xbf16>, vector<16x32xbf16>, vector<8x32xf32> -> vector<8x32xf32>
    %c0_3 = arith.constant 0 : index
    %c0_4 = arith.constant 0 : index
    %4 = vector.load %arg3[%c0_3, %c0_4] : memref<1x32xf32, #tpu.memory_space<vmem>>, vector<1x32xf32>
    %5 = vector.broadcast %4 : vector<1x32xf32> to vector<8x32xf32>
    %6 = arith.addf %3, %5 : vector<8x32xf32>
    %cst_5 = arith.constant 0.000000e+00 : f32
    %7 = vector.broadcast %cst_5 : f32 to vector<8x32xf32>
    %8 = arith.maximumf %6, %7 : vector<8x32xf32>
    %9 = arith.truncf %8 : vector<8x32xf32> to vector<8x32xbf16>
    %c0_6 = arith.constant 0 : index
    %c0_7 = arith.constant 0 : index
    %10 = vector.load %arg4[%c0_6, %c0_7] : memref<32x64xbf16, #tpu.memory_space<vmem>>, vector<32x64xbf16>
    %cst_8 = arith.constant dense<0.000000e+00> : vector<8x64xf32>
    %11 = tpu.matmul %9, %10, %cst_8 {dimension_numbers = #tpu.dot_dimension_numbers<[1], [0], [0], [1], [0, 0, 1, 1], [], []>} : vector<8x32xbf16>, vector<32x64xbf16>, vector<8x64xf32> -> vector<8x64xf32>
    %c0_9 = arith.constant 0 : index
    %c0_10 = arith.constant 0 : index
    %12 = vector.load %arg5[%c0_9, %c0_10] : memref<1x64xf32, #tpu.memory_space<vmem>>, vector<1x64xf32>
    %13 = vector.broadcast %12 : vector<1x64xf32> to vector<8x64xf32>
    %14 = arith.addf %11, %13 : vector<8x64xf32>
    %cst_11 = arith.constant 0.000000e+00 : f32
    %15 = vector.broadcast %cst_11 : f32 to vector<8x64xf32>
    %16 = arith.maximumf %14, %15 : vector<8x64xf32>
    %17 = arith.truncf %16 : vector<8x64xf32> to vector<8x64xbf16>
    %c0_12 = arith.constant 0 : index
    %c0_13 = arith.constant 0 : index
    %18 = vector.load %arg6[%c0_12, %c0_13] : memref<64x64xbf16, #tpu.memory_space<vmem>>, vector<64x64xbf16>
    %cst_14 = arith.constant dense<0.000000e+00> : vector<8x64xf32>
    %19 = tpu.matmul %17, %18, %cst_14 {dimension_numbers = #tpu.dot_dimension_numbers<[1], [0], [0], [1], [0, 0, 1, 1], [], []>} : vector<8x64xbf16>, vector<64x64xbf16>, vector<8x64xf32> -> vector<8x64xf32>
    %c0_15 = arith.constant 0 : index
    %c0_16 = arith.constant 0 : index
    %20 = vector.load %arg7[%c0_15, %c0_16] : memref<1x64xf32, #tpu.memory_space<vmem>>, vector<1x64xf32>
    %21 = vector.broadcast %20 : vector<1x64xf32> to vector<8x64xf32>
    %22 = arith.addf %19, %21 : vector<8x64xf32>
    %cst_17 = arith.constant 0.000000e+00 : f32
    %23 = vector.broadcast %cst_17 : f32 to vector<8x64xf32>
    %24 = arith.maximumf %22, %23 : vector<8x64xf32>
    %25 = arith.truncf %24 : vector<8x64xf32> to vector<8x64xbf16>
    %c0_18 = arith.constant 0 : index
    %c0_19 = arith.constant 0 : index
    %26 = vector.load %arg8[%c0_18, %c0_19] : memref<64x32xbf16, #tpu.memory_space<vmem>>, vector<64x32xbf16>
    %cst_20 = arith.constant dense<0.000000e+00> : vector<8x32xf32>
    %27 = tpu.matmul %25, %26, %cst_20 {dimension_numbers = #tpu.dot_dimension_numbers<[1], [0], [0], [1], [0, 0, 1, 1], [], []>} : vector<8x64xbf16>, vector<64x32xbf16>, vector<8x32xf32> -> vector<8x32xf32>
    %c0_21 = arith.constant 0 : index
    %c0_22 = arith.constant 0 : index
    %28 = vector.load %arg9[%c0_21, %c0_22] : memref<1x32xf32, #tpu.memory_space<vmem>>, vector<1x32xf32>
    %29 = vector.broadcast %28 : vector<1x32xf32> to vector<8x32xf32>
    %30 = arith.addf %27, %29 : vector<8x32xf32>
    %cst_23 = arith.constant 0.000000e+00 : f32
    %31 = vector.broadcast %cst_23 : f32 to vector<8x32xf32>
    %32 = arith.maximumf %30, %31 : vector<8x32xf32>
    %33 = arith.truncf %32 : vector<8x32xf32> to vector<8x32xbf16>
    %c0_24 = arith.constant 0 : index
    %c0_25 = arith.constant 0 : index
    %34 = vector.load %arg10[%c0_24, %c0_25] : memref<32x4xbf16, #tpu.memory_space<vmem>>, vector<32x4xbf16>
    %cst_26 = arith.constant dense<0.000000e+00> : vector<8x4xf32>
    %35 = tpu.matmul %33, %34, %cst_26 {dimension_numbers = #tpu.dot_dimension_numbers<[1], [0], [0], [1], [0, 0, 1, 1], [], []>} : vector<8x32xbf16>, vector<32x4xbf16>, vector<8x4xf32> -> vector<8x4xf32>
    %c0_27 = arith.constant 0 : index
    %c0_28 = arith.constant 0 : index
    %36 = vector.load %arg11[%c0_27, %c0_28] : memref<1x4xf32, #tpu.memory_space<vmem>>, vector<1x4xf32>
    %37 = vector.broadcast %36 : vector<1x4xf32> to vector<8x4xf32>
    %38 = arith.addf %35, %37 : vector<8x4xf32>
    %c0_29 = arith.constant 0 : index
    %c0_30 = arith.constant 0 : index
    %39 = vector.load %arg12[%c0_29, %c0_30] : memref<8x4xf32, #tpu.memory_space<vmem>>, vector<8x4xf32>
    tpu.vector_store %arg12[%c0_29, %c0_30], %38 {strides = array<i32>} : memref<8x4xf32, #tpu.memory_space<vmem>>, vector<8x4xf32>,
    return
  }
  func.func @transform_0(%arg0: i32) -> (i32, i32) {
    %c0_i32 = arith.constant 0 : i32
    %c0_i32_0 = arith.constant 0 : i32
    return %arg0, %c0_i32 : i32, i32
  }
  func.func @transform_1(%arg0: i32) -> (i32, i32) {
    %c0_i32 = arith.constant 0 : i32
    %c0_i32_0 = arith.constant 0 : i32
    %c0_i32_1 = arith.constant 0 : i32
    return %c0_i32, %c0_i32_0 : i32, i32
  }
  func.func @transform_2(%arg0: i32) -> (i32, i32) {
    %c0_i32 = arith.constant 0 : i32
    %c0_i32_0 = arith.constant 0 : i32
    %c0_i32_1 = arith.constant 0 : i32
    return %c0_i32, %c0_i32_0 : i32, i32
  }
  func.func @transform_3(%arg0: i32) -> (i32, i32) {
    %c0_i32 = arith.constant 0 : i32
    %c0_i32_0 = arith.constant 0 : i32
    %c0_i32_1 = arith.constant 0 : i32
    return %c0_i32, %c0_i32_0 : i32, i32
  }
  func.func @transform_4(%arg0: i32) -> (i32, i32) {
    %c0_i32 = arith.constant 0 : i32
    %c0_i32_0 = arith.constant 0 : i32
    %c0_i32_1 = arith.constant 0 : i32
    return %c0_i32, %c0_i32_0 : i32, i32
  }
  func.func @transform_5(%arg0: i32) -> (i32, i32) {
    %c0_i32 = arith.constant 0 : i32
    %c0_i32_0 = arith.constant 0 : i32
    %c0_i32_1 = arith.constant 0 : i32
    return %c0_i32, %c0_i32_0 : i32, i32
  }
  func.func @transform_6(%arg0: i32) -> (i32, i32) {
    %c0_i32 = arith.constant 0 : i32
    %c0_i32_0 = arith.constant 0 : i32
    %c0_i32_1 = arith.constant 0 : i32
    return %c0_i32, %c0_i32_0 : i32, i32
  }
  func.func @transform_7(%arg0: i32) -> (i32, i32) {
    %c0_i32 = arith.constant 0 : i32
    %c0_i32_0 = arith.constant 0 : i32
    %c0_i32_1 = arith.constant 0 : i32
    return %c0_i32, %c0_i32_0 : i32, i32
  }
  func.func @transform_8(%arg0: i32) -> (i32, i32) {
    %c0_i32 = arith.constant 0 : i32
    %c0_i32_0 = arith.constant 0 : i32
    %c0_i32_1 = arith.constant 0 : i32
    return %c0_i32, %c0_i32_0 : i32, i32
  }
  func.func @transform_9(%arg0: i32) -> (i32, i32) {
    %c0_i32 = arith.constant 0 : i32
    %c0_i32_0 = arith.constant 0 : i32
    %c0_i32_1 = arith.constant 0 : i32
    return %c0_i32, %c0_i32_0 : i32, i32
  }
  func.func @transform_10(%arg0: i32) -> (i32, i32) {
    %c0_i32 = arith.constant 0 : i32
    %c0_i32_0 = arith.constant 0 : i32
    %c0_i32_1 = arith.constant 0 : i32
    return %c0_i32, %c0_i32_0 : i32, i32
  }
  func.func @transform_11(%arg0: i32) -> (i32, i32) {
    %c0_i32 = arith.constant 0 : i32
    %c0_i32_0 = arith.constant 0 : i32
    return %arg0, %c0_i32 : i32, i32
  }
}

</mosaic_0001>

<bundles_post_ra>
// kernel: tpu_custom_call.1
= control target key start
LH: loop header
LB: loop body
LE: loop exit
PB: predicated region body
PF: predicated region fallthrough
CT: control target
= control target key end

     0   :  { %16 = vsyncpa [#allocation3], 0  ;;  %s552_s17 = smov [#allocation2]   ;;  %s711_s0 = inlined_call_operand.vmem [shape: f32[8,16], index: 0, kind: input, shape index: {}]   ;;  %s712_s1 = inlined_call_operand.vmem [shape: bf16[16,32], index: 1, kind: input, shape index: {}]   ;;  %s713_s2 = inlined_call_operand.vmem [shape: f32[1,32], index: 2, kind: input, shape index: {}]   ;;  %s714_s3 = inlined_call_operand.vmem [shape: bf16[32,64], index: 3, kind: input, shape index: {}]   ;;  %s715_s4 = inlined_call_operand.hbm [shape: f32[1,64], index: 4, kind: input, shape index: {}]   ;;  %s716_s5 = inlined_call_operand.vmem [shape: bf16[64,64], index: 5, kind: input, shape index: {}]   ;;  %s717_s6 = inlined_call_operand.vmem [shape: f32[1,64], index: 6, kind: input, shape index: {}]   ;;  %s718_s7 = inlined_call_operand.vmem [shape: bf16[64,32], index: 7, kind: input, shape index: {}]   ;;  %s719_s8 = inlined_call_operand.vmem [shape: f32[1,32], index: 8, kind: input, shape index: {}]   ;;  %s720_s9 = inlined_call_operand.vmem [shape: bf16[32,4], index: 9, kind: input, shape index: {}]   ;;  %s721_s10 = inlined_call_operand.vmem [shape: f32[1,4], index: 10, kind: input, shape index: {}]   ;;  %s722_s11 = inlined_call_operand.vmem [shape: f32[8,4], index: 11, kind: output, shape index: {}]  }
   0x1   :  { %s31_s18 = sshll.u32 %s552_s17, 4  ;;  %s528_s21 = scalar_lea.hbm %s715_s4, 16  ;;  %s32_s18 = int_to_ptr.vmem [resolvable:$true] %s31_s18 }
   0x2   :  { %p529_p0 = scmp.ne.s32.totalorder %s715_s4, %s528_s21  ;;  %p532_p1 = scmp.lt.u32.totalorder %s528_s21, %s715_s4 }
   0x4   :  { %p534_p2 = pnand %p532_p1, %p529_p0 }
   0x6   :  { %537 = shalt.err (!%p534_p2)
}
   0x7   :  { %s538_s26 = scalar_lea.vmem %s32_s18, 16  ;;  %s542_s27 = scalar_lea.vmem %s32_s18, 32 }
   0x8   :  { %p539_p3 = scmp.ne.s32.totalorder %s32_s18, %s538_s26  ;;  %p543_p4 = scmp.lt.s32.totalorder %s32_s18, %s32_s18 }
   0x9   :  { %p544_p5 = scmp.lt.s32.totalorder %s542_s27, %s538_s26 }
   0xb   :  { %p545_p6 = por %p544_p5, %p543_p4 }
   0xd   :  { %p546_p7 = pnand %p545_p6, %p539_p3 }
   0xf   :  { %549 = shalt.err (!%p546_p7)
}
  0x10   :  { %34 = dma.hbm_to_vmem [thread:$0]  %s715_s4, 16, %s32_s18, [#allocation3]  }
  0x11   :  { %550 = dma.done.wait [#allocation3], 16  }
  0x12   :  { %551 = vsyncadd [#allocation3], 4294967280  ;;  %v553_v0 = vmov 0.0   ;;  %vm554_vm0 = vmmov 0   ;;  %v515_v1 = vld [vmem:[%s712_s1] sm:$0xff]   ;;  %vm68_vm1 = vcmask 130048  }
  0x13   :  { %466 = vmatprep.subr.bf16.mxu0 %v553_v0  ;;  %468 = vmatprep.mubr.msk.bf16.mxu0 %vm554_vm0, %v553_v0  ;;  %v51_v2 = vld [vmem:[%s711_s0] sm:$0xff]  ;;  %v517_v5 = vld [vmem:[%s714_s3 + $0x8] sm:$0xff]   ;;  %vm137_vm2 = vcmask 261120   ;;  %v520_v16 = vld [vmem:[%s716_s5 + $0x10] sm:$0xff]   ;;  %vm222_vm3 = vcmask 523264   ;;  %vm418_vm4 = vcmask 31744  }
  0x14   :  { %472 = vmatprep.subr.bf16.mxu1 %v553_v0  ;;  %476 = vmatprep.mubr.msk.bf16.mxu1 %vm554_vm0, %v553_v0  ;;  %v52_v3 = vpack.c.bf16 %v51_v2, %v51_v2  ;;  %v516_v4 = vld [vmem:[%s714_s3] sm:$0xff]   ;;  %v519_v7 = vld [vmem:[%s716_s5 + $0x8] sm:$0xff]   ;;  %v521_v17 = vld [vmem:[%s716_s5 + $0x18] sm:$0xff]  }
  0x15   :  { %467 = vmatpush3.bf16.msra.mxu0 %v515_v1  ;;  %473 = vmatpush3.bf16.msra.mxu1 %v516_v4  ;;  %v518_v6 = vld [vmem:[%s716_s5] sm:$0xff]   ;;  %v523_v19 = vld [vmem:[%s718_s7 + $0x8] sm:$0xff]   ;;  %v524_v28 = vld [vmem:[%s718_s7 + $0x10] sm:$0xff]  }
  0x16   :  { %480 = vmatprep.subr.bf16.mxu0 %v553_v0  ;;  %474 = vmatprep.subr.bf16.mxu1 %v553_v0  ;;  %v425_v8 = vld [vmem:[%s713_s2] ss:$0 sm:$0xff]  ;;  %v525_v29 = vld [vmem:[%s718_s7 + $0x18] sm:$0xff]   ;;  %v527_v39 = vld [vmem:[%s720_s9 + $0x8] sm:$0xff]  }
  0x17   :  { %v522_v18 = vld [vmem:[%s718_s7] sm:$0xff]  }
  0x18   :  { %469 = vmatmul.mubr.msk.bf16.vlgmr.msra.gmra.mrb[0].mxu0 %vm68_vm1, %v52_v3  ;;  %v428_v20 = vld [vmem:[#allocation2] ss:$0 sm:$0xff] }
  0x19   :  { %488 = vmatprep.mubr.msk.bf16.mxu0 %vm554_vm0, %v553_v0  ;;  %475 = vmatpush3.bf16.msra.mxu1 %v517_v5  ;;  %v526_v30 = vld [vmem:[%s720_s9] sm:$0xff]  }
  0x1a   :  { %492 = vmatprep.subr.bf16.mxu1 %v553_v0  ;;  %481 = vmatpush3.bf16.msra.mxu0 %v518_v6  ;;  %v432_v31 = vld [vmem:[%s717_s6] ss:$0 sm:$0xff] }
  0x1b   :  { %482 = vmatprep.subr.bf16.mxu0 %v553_v0  ;;  %v438_v40 = vld [vmem:[%s719_s8] ss:$0 sm:$0xff] }
  0x1c   :  { %v444_v48 = vld [vmem:[%s721_s10] ss:$0 sm:$0xff] }
  0x1e   :  { %483 = vmatpush3.bf16.msra.mxu0 %v519_v7 }
  0x1f   :  { %484 = vmatprep.subr.bf16.mxu0 %v553_v0 }
  0x22   :  { %485 = vmatpush3.bf16.msra.mxu0 %v520_v16 }
  0x23   :  { %486 = vmatprep.subr.bf16.mxu0 %v553_v0 }
  0x26   :  { %487 = vmatpush3.bf16.msra.mxu0 %v521_v17 }
  0x27   :  { %504 = vmatprep.subr.bf16.mxu0 %v553_v0 }
  0xeb   :  { %v106_v9 = vpop.f32.mrb[0].mxu0 }
  0xec   :  { %v107_v10 = vadd.f32 %v425_v8, %v106_v9  ;;  %v470_v11 = vpop.f32.mrb[1].mxu0 }
  0xed   :  { %v109_v12 = vpop.f32.mrb[2].mxu0 }
  0xee   :  { %v112_v13 = vmax.f32 %v107_v10, 0.0  ;;  %v471_v14 = vpop.f32.mrb[3].mxu0 }
  0xf0   :  { %v113_v15 = vpack.c.bf16 %v112_v13, %v112_v13 }
  0xf2   :  { %477 = vmatmul.mubr.msk.bf16.vlgmr.msra.gmra.mrb[0].mxu1 %vm137_vm2, %v113_v15 }
  0xf3   :  { %500 = vmatprep.mubr.msk.bf16.mxu1 %vm554_vm0, %v553_v0  ;;  %493 = vmatpush3.bf16.msra.mxu1 %v522_v18 }
  0xf4   :  { %494 = vmatprep.subr.bf16.mxu1 %v553_v0 }
  0xf7   :  { %495 = vmatpush3.bf16.msra.mxu1 %v523_v19 }
  0xf8   :  { %496 = vmatprep.subr.bf16.mxu1 %v553_v0 }
  0xfb   :  { %497 = vmatpush3.bf16.msra.mxu1 %v524_v28 }
  0xfc   :  { %498 = vmatprep.subr.bf16.mxu1 %v553_v0 }
  0xff   :  { %499 = vmatpush3.bf16.msra.mxu1 %v525_v29 }
 0x1c5   :  { %v175_v21 = vpop.f32.mrb[0].mxu1 }
 0x1c6   :  { %v176_v22 = vadd.f32 %v428_v20, %v175_v21  ;;  %v478_v23 = vpop.f32.mrb[1].mxu1 }
 0x1c7   :  { %v178_v24 = vpop.f32.mrb[2].mxu1 }
 0x1c8   :  { %v181_v25 = vmax.f32 %v176_v22, 0.0  ;;  %v479_v26 = vpop.f32.mrb[3].mxu1 }
 0x1ca   :  { %v182_v27 = vpack.c.bf16 %v181_v25, %v181_v25 }
 0x1cc   :  { %489 = vmatmul.mubr.msk.bf16.vlgmr.msra.gmra.mrb[4].mxu0 %vm222_vm3, %v182_v27 }
 0x1cd   :  { %508 = vmatprep.mubr.msk.bf16.mxu0 %vm554_vm0, %v553_v0  ;;  %505 = vmatpush3.bf16.msra.mxu0 %v526_v30 }
 0x1ce   :  { %506 = vmatprep.subr.bf16.mxu0 %v553_v0 }
 0x1d1   :  { %507 = vmatpush3.bf16.msra.mxu0 %v527_v39 }
 0x29f   :  { %v260_v32 = vpop.f32.mrb[4].mxu0 }
 0x2a0   :  { %v261_v33 = vadd.f32 %v432_v31, %v260_v32  ;;  %v490_v34 = vpop.f32.mrb[5].mxu0 }
 0x2a1   :  { %v263_v35 = vpop.f32.mrb[6].mxu0 }
 0x2a2   :  { %v266_v36 = vmax.f32 %v261_v33, 0.0  ;;  %v491_v37 = vpop.f32.mrb[7].mxu0 }
 0x2a4   :  { %v267_v38 = vpack.c.bf16 %v266_v36, %v266_v36 }
 0x2a6   :  { %501 = vmatmul.mubr.msk.bf16.vlgmr.msra.gmra.mrb[4].mxu1 %vm222_vm3, %v267_v38 }
 0x379   :  { %v344_v41 = vpop.f32.mrb[4].mxu1 }
 0x37a   :  { %v345_v42 = vadd.f32 %v438_v40, %v344_v41  ;;  %v502_v43 = vpop.f32.mrb[5].mxu1 }
 0x37b   :  { %v347_v44 = vpop.f32.mrb[6].mxu1 }
 0x37c   :  { %v350_v45 = vmax.f32 %v345_v42, 0.0  ;;  %v503_v46 = vpop.f32.mrb[7].mxu1 }
 0x37e   :  { %v351_v47 = vpack.c.bf16 %v350_v45, %v350_v45 }
 0x380   :  { %509 = vmatmul.mubr.msk.bf16.vlgmr.msra.gmra.mrb[8].mxu0 %vm137_vm2, %v351_v47 }
 0x453   :  { %v412_v49 = vpop.f32.mrb[8].mxu0 }
 0x454   :  { %v413_v50 = vadd.f32 %v444_v48, %v412_v49  ;;  %v510_v51 = vpop.f32.mrb[9].mxu0 }
 0x455   :  { %v415_v52 = vpop.f32.mrb[10].mxu0 }
 0x456   :  { %419 = vst.msk [vmem:[%s722_s11] sm:$0xff] %vm418_vm4, %v413_v50  ;;  %v511_v53 = vpop.f32.mrb[11].mxu0 }
 0x457   :  { %424 = vsyncpa [#allocation3], 1 }

</bundles_post_ra>
